<compile_context>
chip_gen: v7x
topology: tpu7x:2x2x1
jax: 0.10.0
libtpu: 0.0.40
codegen_flags: <defaults>
</compile_context>

<pallas_src>
import math
from functools import partial

import jax
import jax.numpy as jnp
from jax.experimental import pallas as pl
from jax.experimental.pallas import tpu as pltpu


# -----------------------------------------------------------------------------
# Parameter setup (plain JAX glue): sinusoidal table pe[max_len, d_model]
# -----------------------------------------------------------------------------
def make_positional_encoding(d_model: int, max_len: int = 5000) -> jnp.ndarray:
    position = jnp.arange(max_len, dtype=jnp.float32)[:, None]                 # (L, 1)
    div_term = jnp.exp(
        jnp.arange(0, d_model, 2, dtype=jnp.float32)
        * (-math.log(10000.0) / d_model)
    )                                                                          # (D/2,)
    angles = position * div_term                                               # (L, D/2)
    pe = jnp.zeros((max_len, d_model), dtype=jnp.float32)
    pe = pe.at[:, 0::2].set(jnp.sin(angles))
    pe = pe.at[:, 1::2].set(jnp.cos(angles))
    return pe                                                                  # (L, D)


# -----------------------------------------------------------------------------
# Kernels
# -----------------------------------------------------------------------------
def _replicate_lanes(pe_tile, batch: int):
    # (tS, D) -> (tS, B*D).  Row-major flatten of (S, B, D) puts element
    # (s, b, d) at column b*D + d, so pe must repeat along the lane axis.
    if batch == 1:
        return pe_tile
    return jnp.concatenate([pe_tile] * batch, axis=-1)


def pe_add_kernel(x_ref, pe_ref, o_ref, *, batch: int):
    # eval-mode forward: out = x + pe   (dropout is identity in eval)
    o_ref[...] = x_ref[...] + _replicate_lanes(pe_ref[...], batch)


def pe_add_dropout_kernel(x_ref, bits_ref, pe_ref, o_ref, *,
                          batch: int, threshold: int, scale: float):
    # training-mode forward with host-provided uint32 random bits.
    # keep iff bits >= threshold (threshold = round(p * 2^32)), fused scale.
    y = x_ref[...] + _replicate_lanes(pe_ref[...], batch)
    keep = bits_ref[...] >= jnp.uint32(threshold)
    o_ref[...] = jnp.where(keep, y * jnp.asarray(scale, y.dtype),
                           jnp.zeros_like(y))


def pe_add_dropout_tpu_prng_kernel(seed_ref, x_ref, pe_ref, o_ref, *,
                                   batch: int, threshold: int, scale: float):
    # training-mode forward using the in-kernel hardware PRNG (real TPU only).
    # Per-block seeding so every grid tile gets an independent mask.
    pltpu.prng_seed(seed_ref[0], pl.program_id(0))
    y = x_ref[...] + _replicate_lanes(pe_ref[...], batch)
    bits = pltpu.bitcast(pltpu.prng_random_bits(y.shape), jnp.uint32)
    keep = bits >= jnp.uint32(threshold)
    o_ref[...] = jnp.where(keep, y * jnp.asarray(scale, y.dtype),
                           jnp.zeros_like(y))


# -----------------------------------------------------------------------------
# Wrapper
# -----------------------------------------------------------------------------
def _pick_tile_s(S: int, row_bytes: int, target_bytes: int = 2 * 1024 * 1024) -> int:
    """S-tile size giving ~2 MiB x-blocks (safe for v5e/v6e/v7x scoped VMEM)."""
    if S <= 8:
        return S
    t = max(1, target_bytes // max(row_bytes, 1))
    t = (t // 8) * 8                       # sublane-aligned
    return max(8, min(t, S))


def positional_encoding_forward(
    x: jnp.ndarray,             # (S, B, D)
    pe_table: jnp.ndarray,      # (max_len, D)
    *,
    dropout_p: float = 0.1,
    training: bool = False,
    rng_key=None,
    seed: int = 0,
    use_tpu_prng: bool = False,
) -> jnp.ndarray:
    S, B, D = x.shape
    BD = B * D
    dtype = x.dtype
    itemsize = jnp.dtype(dtype).itemsize

    pe = pe_table[:S].astype(dtype)        # cast once in the wrapper (glue)
    x2 = x.reshape(S, BD)                  # row-major reshape: free, no copy

    tS = _pick_tile_s(S, BD * itemsize)
    grid = (pl.cdiv(S, tS),)

    x_spec = pl.BlockSpec((tS, BD), lambda i: (i, 0))
    pe_spec = pl.BlockSpec((tS, D), lambda i: (i, 0))
    out_spec = pl.BlockSpec((tS, BD), lambda i: (i, 0))

    compiler_params = pltpu.CompilerParams(
        dimension_semantics=("parallel",),          # megacore split on v7x
        vmem_limit_bytes=32 * 1024 * 1024,          # headroom for double-buffer
    )

    # ---------------- eval path (or p == 0): out = x + pe --------------------
    if (not training) or dropout_p <= 0.0:
        cost = pl.CostEstimate(
            flops=S * BD, transcendentals=0,
            bytes_accessed=2 * S * BD * itemsize + S * D * itemsize)
        out2 = pl.pallas_call(
            partial(pe_add_kernel, batch=B),
            out_shape=jax.ShapeDtypeStruct((S, BD), dtype),
            grid=grid,
            in_specs=[x_spec, pe_spec],
            out_specs=out_spec,
            compiler_params=compiler_params,
            cost_estimate=cost,
        )(x2, pe)
        return out2.reshape(S, B, D)

    if dropout_p >= 1.0:
        return jnp.zeros_like(x)

    threshold = min(int(round(dropout_p * (2 ** 32))), 2 ** 32 - 1)
    scale = 1.0 / (1.0 - dropout_p)

    # ---------------- training path A: in-kernel hardware PRNG ---------------
    # Avoids the extra bits HBM read, but pltpu.prng_seed has no CPU/interpret
    # lowering, so it is opt-in for real TPU hardware only.
    if use_tpu_prng:
        seed_arr = jnp.array([seed], dtype=jnp.int32)
        cost = pl.CostEstimate(
            flops=3 * S * BD, transcendentals=0,
            bytes_accessed=2 * S * BD * itemsize + S * D * itemsize)
        out2 = pl.pallas_call(
            partial(pe_add_dropout_tpu_prng_kernel, batch=B,
                    threshold=threshold, scale=scale),
            out_shape=jax.ShapeDtypeStruct((S, BD), dtype),
            grid_spec=pltpu.PrefetchScalarGridSpec(
                num_scalar_prefetch=1,
                grid=grid,
                in_specs=[pl.BlockSpec((tS, BD), lambda i, s_ref: (i, 0)),
                          pl.BlockSpec((tS, D), lambda i, s_ref: (i, 0))],
                out_specs=pl.BlockSpec((tS, BD), lambda i, s_ref: (i, 0)),
            ),
            compiler_params=compiler_params,
            cost_estimate=cost,
        )(seed_arr, x2, pe)
        return out2.reshape(S, B, D)

    # ---------------- training path B (default, portable) --------------------
    # Random bits generated with jax.random (glue) and streamed through the
    # same tiled pipeline; threshold compare + scale fused in-kernel.
    # TODO(synk): bit-exact reproduction of torch's RNG stream is not possible;
    # only the Bernoulli(1-p) keep / 1/(1-p) scaling semantics are reproduced.
    if rng_key is None:
        rng_key = jax.random.PRNGKey(seed)
    bits = jax.random.bits(rng_key, (S, BD), dtype=jnp.uint32)

    cost = pl.CostEstimate(
        flops=3 * S * BD, transcendentals=0,
        bytes_accessed=2 * S * BD * itemsize + S * BD * 4 + S * D * itemsize)
    out2 = pl.pallas_call(
        partial(pe_add_dropout_kernel, batch=B,
                threshold=threshold, scale=scale),
        out_shape=jax.ShapeDtypeStruct((S, BD), dtype),
        grid=grid,
        in_specs=[x_spec, x_spec, pe_spec],     # bits has the same tiling as x
        out_specs=out_spec,
        compiler_params=compiler_params,
        cost_estimate=cost,
    )(x2, bits, pe)
    return out2.reshape(S, B, D)


# -----------------------------------------------------------------------------
# Demo / self-check
# -----------------------------------------------------------------------------
if __name__ == "__main__":
    SEQ, BATCH, D_MODEL = 8, 2, 32
    MAX_LEN = 64

    key = jax.random.PRNGKey(0)
    k_x, k_drop = jax.random.split(key)
    x = jax.random.normal(k_x, (SEQ, BATCH, D_MODEL), dtype=jnp.float32)
    pe_table = make_positional_encoding(D_MODEL, MAX_LEN)

    # ---- eval-mode forward (dropout == identity), deterministic -------------
    out = positional_encoding_forward(x, pe_table, dropout_p=0.1, training=False)
    out = jax.block_until_ready(out)
    ref = x + pe_table[:SEQ][:, None, :]
    assert out.shape == (SEQ, BATCH, D_MODEL)
    assert jnp.allclose(out, ref, atol=1e-6, rtol=1e-6)

    # ---- training-mode forward (inverted dropout), portable bits path -------
    p = 0.1
    out_train = positional_encoding_forward(
        x, pe_table, dropout_p=p, training=True, rng_key=k_drop
    )
    out_train = jax.block_until_ready(out_train)

    # Exact reference for the portable path (same bits / threshold / scale).
    thresh = min(int(round(p * (2 ** 32))), 2 ** 32 - 1)
    bits = jax.random.bits(k_drop, (SEQ, BATCH * D_MODEL), dtype=jnp.uint32)
    keep = (bits >= jnp.uint32(thresh)).reshape(SEQ, BATCH, D_MODEL)
    ref_train = jnp.where(keep, ref * jnp.float32(1.0 / (1.0 - p)), 0.0)
    assert out_train.shape == (SEQ, BATCH, D_MODEL)
    assert jnp.allclose(out_train, ref_train, atol=1e-6, rtol=1e-6)

    print("KERNEL_OK")
</pallas_src>

<mosaic_0001>
module attributes {stable_mosaic.version = 11 : i64} {
  func.func @pe_add_kernel(%arg0: i32, %arg1: memref<8x64xf32, #tpu.memory_space<vmem>>, %arg2: memref<8x32xf32, #tpu.memory_space<vmem>>, %arg3: memref<8x64xf32, #tpu.memory_space<vmem>>) attributes {dimension_semantics = [#tpu.dimension_semantics<parallel>], iteration_bounds = array<i64: 1>, scalar_prefetch = 0 : i64, scratch_operands = 0 : i64, tpu.core_type = #tpu.core_type<tc>, window_params = [{transform_indices = @transform_0, window_bounds = array<i64: 8, 64>}, {transform_indices = @transform_1, window_bounds = array<i64: 8, 32>}, {transform_indices = @transform_2, window_bounds = array<i64: 8, 64>}]} {
    %c0 = arith.constant 0 : index
    %c0_0 = arith.constant 0 : index
    %0 = vector.load %arg1[%c0, %c0_0] : memref<8x64xf32, #tpu.memory_space<vmem>>, vector<8x64xf32>
    %c0_1 = arith.constant 0 : index
    %c0_2 = arith.constant 0 : index
    %1 = vector.load %arg2[%c0_1, %c0_2] : memref<8x32xf32, #tpu.memory_space<vmem>>, vector<8x32xf32>
    %2 = tpu.concatenate %1, %1 in 1 : vector<8x32xf32>, vector<8x32xf32> -> vector<8x64xf32>
    %3 = arith.addf %0, %2 : vector<8x64xf32>
    %c0_3 = arith.constant 0 : index
    %c0_4 = arith.constant 0 : index
    %4 = vector.load %arg3[%c0_3, %c0_4] : memref<8x64xf32, #tpu.memory_space<vmem>>, vector<8x64xf32>
    tpu.vector_store %arg3[%c0_3, %c0_4], %3 {strides = array<i32>} : memref<8x64xf32, #tpu.memory_space<vmem>>, vector<8x64xf32>,
    return
  }
  func.func @transform_0(%arg0: i32) -> (i32, i32) {
    %c0_i32 = arith.constant 0 : i32
    %c0_i32_0 = arith.constant 0 : i32
    return %arg0, %c0_i32 : i32, i32
  }
  func.func @transform_1(%arg0: i32) -> (i32, i32) {
    %c0_i32 = arith.constant 0 : i32
    %c0_i32_0 = arith.constant 0 : i32
    return %arg0, %c0_i32 : i32, i32
  }
  func.func @transform_2(%arg0: i32) -> (i32, i32) {
    %c0_i32 = arith.constant 0 : i32
    %c0_i32_0 = arith.constant 0 : i32
    return %arg0, %c0_i32 : i32, i32
  }
}

</mosaic_0001>

<bundles_post_ra>
// kernel: tpu_custom_call.1
= control target key start
LH: loop header
LB: loop body
LE: loop exit
PB: predicated region body
PF: predicated region fallthrough
CT: control target
= control target key end

     0   :  { %7 = vsyncpa [#allocation3], 0  ;;  %s194_s0 = inlined_call_operand.hbm [shape: f32[8,64], index: 0, kind: input, shape index: {}]   ;;  %s195_s1 = inlined_call_operand.hbm [shape: f32[8,32], index: 1, kind: input, shape index: {}]   ;;  %s196_s2 = inlined_call_operand.hbm [shape: f32[8,64], index: 2, kind: output, shape index: {}]  }
   0x1   :  { %8 = vsyncpa [#allocation6], 0 }
   0x2   :  { %9 = vsyncpa [#allocation4], 0  ;;  %s139_s9 = smov [#allocation2]   ;;  %s140_s11 = smov [#allocation5]  }
   0x3   :  { %s16_s10 = sshll.u32 %s139_s9, 4  ;;  %s26_s12 = sshll.u32 %s140_s11, 4  ;;  %s17_s10 = int_to_ptr.vmem [resolvable:$true] %s16_s10  ;;  %s27_s12 = int_to_ptr.vmem [resolvable:$true] %s26_s12 }
   0x4   :  { %s67_s15 = scalar_lea.hbm %s194_s0, 128 }
   0x5   :  { %p68_p0 = scmp.ne.s32.totalorder %s194_s0, %s67_s15  ;;  %p71_p1 = scmp.lt.u32.totalorder %s67_s15, %s194_s0 }
   0x7   :  { %p73_p2 = pnand %p71_p1, %p68_p0 }
   0x9   :  { %76 = shalt.err (!%p73_p2)
}
   0xa   :  { %s77_s20 = scalar_lea.vmem %s17_s10, 128  ;;  %p82_p4 = scmp.lt.s32.totalorder %s17_s10, %s17_s10 }
   0xb   :  { %p78_p3 = scmp.ne.s32.totalorder %s17_s10, %s77_s20  ;;  %p83_p5 = scmp.lt.s32.totalorder %s77_s20, %s77_s20 }
   0xd   :  { %p84_p6 = por %p83_p5, %p82_p4 }
   0xf   :  { %p85_p7 = pnand %p84_p6, %p78_p3 }
  0x11   :  { %88 = shalt.err (!%p85_p7)
}
  0x12   :  { %19 = dma.hbm_to_vmem [thread:$0]  %s194_s0, 128, %s17_s10, [#allocation3]  }
  0x13   :  { %s89_s25 = scalar_lea.hbm %s195_s1, 128 }
  0x14   :  { %p90_p8 = scmp.ne.s32.totalorder %s195_s1, %s89_s25  ;;  %p93_p9 = scmp.lt.u32.totalorder %s89_s25, %s195_s1 }
  0x16   :  { %p95_p10 = pnand %p93_p9, %p90_p8 }
  0x18   :  { %98 = shalt.err (!%p95_p10)
}
  0x19   :  { %s99_s30 = scalar_lea.vmem %s27_s12, 128  ;;  %p104_p12 = scmp.lt.s32.totalorder %s27_s12, %s27_s12 }
  0x1a   :  { %p100_p11 = scmp.ne.s32.totalorder %s27_s12, %s99_s30  ;;  %p105_p13 = scmp.lt.s32.totalorder %s99_s30, %s99_s30 }
  0x1c   :  { %p106_p0 = por %p105_p13, %p104_p12 }
  0x1e   :  { %p107_p1 = pnand %p106_p0, %p100_p11 }
  0x20   :  { %110 = shalt.err (!%p107_p1)
}
  0x21   :  { %29 = dma.hbm_to_vmem [thread:$0]  %s195_s1, 128, %s27_s12, [#allocation6]  }
  0x22   :  { %133 = dma.done.wait [#allocation3], 128  }
  0x23   :  { %134 = vsyncadd [#allocation3], 4294967168 }
  0x24   :  { %135 = dma.done.wait [#allocation6], 128  }
  0x25   :  { %136 = vsyncadd [#allocation6], 4294967168  ;;  %v37_v0 = vld [vmem:[#allocation5] sm:$0xff]  ;;  %s141_s4 = smov 32   ;;  %vm42_vm0 = vcmask 261120   ;;  %v36_v1 = vld [vmem:[#allocation2] sm:$0xff] }
  0x26   :  { %39 = vrot.lane.b32.xlu0 %v37_v0, %s141_s4  ;;  %s142_s5 = smov [#allocation7]   ;;  %vm45_vm1 = vcmask 523264  }
  0x27   :  { %s53_s6 = sshll.u32 %s142_s5, 4  ;;  %s54_s6 = int_to_ptr.vmem [resolvable:$true] %s53_s6 }
  0x28   :  { %s111_s7 = scalar_lea.vmem %s54_s6, 128  ;;  %p116_p3 = scmp.lt.s32.totalorder %s54_s6, %s54_s6 }
  0x29   :  { %p112_p2 = scmp.ne.s32.totalorder %s54_s6, %s111_s7  ;;  %p117_p4 = scmp.lt.s32.totalorder %s111_s7, %s111_s7 }
  0x2b   :  { %p118_p5 = por %p117_p4, %p116_p3 }
  0x2d   :  { %p119_p6 = pnand %p118_p5, %p112_p2 }
  0x98   :  { %v40_v2 = vpop.permute.xlu0 %39 }
  0x99   :  { %v43_v3 = vsel %vm42_vm0, %v37_v0, %v40_v2 }
  0x9a   :  { %v44_v4 = vadd.f32 %v43_v3, %v36_v1 }
  0x9c   :  { %46 = vst.msk [vmem:[#allocation7] sm:$0xff] %vm45_vm1, %v44_v4 }
  0x9d   :  { %122 = shalt.err (!%p119_p6)
}
  0x9e   :  { %s123_s9 = scalar_lea.hbm %s196_s2, 128 }
  0x9f   :  { %p124_p7 = scmp.ne.s32.totalorder %s196_s2, %s123_s9  ;;  %p127_p8 = scmp.lt.u32.totalorder %s123_s9, %s196_s2 }
  0xa1   :  { %p129_p9 = pnand %p127_p8, %p124_p7 }
  0xa3   :  { %132 = shalt.err (!%p129_p9)
}
  0xa4   :  { %56 = dma.vmem_to_hbm [thread:$0]  %s54_s6, 128, %s196_s2, [#allocation4]  }
  0xa5   :  { %137 = dma.done.wait [#allocation4], 128  }
  0xa6   :  { %138 = vsyncadd [#allocation4], 4294967168 }
  0xa7   :  { %60 = vsyncpa [#allocation3], 1 }
  0xa8   :  { %61 = vsyncpa [#allocation6], 1 }
  0xa9   :  { %62 = vsyncpa [#allocation4], 1 }

</bundles_post_ra>
